<compile_context>
chip_gen: v7x
topology: tpu7x:2x2x1
jax: 0.10.0
libtpu: 0.0.40
codegen_flags: <defaults>
</compile_context>

<pallas_src>
import numpy as np
import jax
import jax.numpy as jnp
from jax.experimental import pallas as pl
from jax.experimental.pallas import tpu as pltpu


# ---------------------------------------------------------------------------
# Hot path: what Model.forward actually returns.
# ---------------------------------------------------------------------------
def model_forward(v1):
    """Returns (concatenated_tensor, split_tensors) exactly as the module does.

    torch.split(v1, [4, 4], dim=0) followed by torch.cat(dim=0) reproduces v1
    bit-for-bit, so this path is metadata-only (perf-review item 1): no
    pallas_call, no aliasing-forced copy.
    """
    assert v1.shape[0] == 8, "split sizes [4, 4] on dim 0 require batch == 8"
    cat = v1
    split_tensors = (cat[:4], cat[4:])
    return cat, split_tensors


# ---------------------------------------------------------------------------
# Dead `features` branch (conv + relu, both applied to `cat`).  Its results
# never reach Model.forward's return value; exercised in the self-test only.
# One fused Pallas kernel for the whole branch.
# ---------------------------------------------------------------------------
def conv_relu_kernel(p_ref, w_ref, b_ref, cat_ref, y_ref, r_ref):
    """Fused features branch.

    p_ref   (27, TM)    im2col'd activations (lane-dense, TM % 128 == 0)
    w_ref   (Cout, 27)  flattened conv weight, transposed
    b_ref   (Cout, 1)   bias column
    cat_ref (N, CHW/2)  half of the flat (N, C*H*W) view of cat
    y_ref   (Cout, TM)  conv output (lane-dense -> unmasked stores)
    r_ref   (N, CHW/2)  ReLU(cat) tile
    """
    y = jnp.dot(w_ref[...], p_ref[...], preferred_element_type=jnp.float32)
    y_ref[...] = (y + b_ref[...]).astype(y_ref.dtype)
    r_ref[...] = jnp.maximum(cat_ref[...], 0.0)


@jax.jit
def features_forward(cat, conv_w_hwio, conv_b):
    """Conv2d(3,32,3,1,1)(cat) and ReLU(cat) — the module's `features` loop."""
    N, Cin, H, W = cat.shape
    Cout = conv_w_hwio.shape[-1]
    M = N * H * W                      # 2048
    K = 9 * Cin                        # 27
    CHW = Cin * H * W                  # 768
    n_steps = 2                        # one half of M per TensorCore on v7x
    TM = M // n_steps                  # 1024 (multiple of 128 -> lane-dense)
    TL = CHW // n_steps                # 384  (multiple of 128)

    # ---- wrapper-side im2col / layout plumbing (fused by XLA in this jit) ---
    x = jnp.transpose(cat, (0, 2, 3, 1))                        # NCHW -> NHWC
    xpad = jnp.pad(x, ((0, 0), (1, 1), (1, 1), (0, 0)))         # (N, H+2, W+2, Cin)
    taps = [xpad[:, dh:dh + H, dw:dw + W, :]                    # 9 x (N,H,W,Cin)
            for dh in range(3) for dw in range(3)]
    patches_T = jnp.stack(taps, axis=3).reshape(M, K).T         # (K, M)
    wT = conv_w_hwio.reshape(K, Cout).T                         # (Cout, K)
    b_col = conv_b.reshape(Cout, 1)
    cat_flat = cat.reshape(N, CHW)                               # (8, 768)

    y_cm, relu_flat = pl.pallas_call(
        conv_relu_kernel,
        grid=(n_steps,),
        in_specs=[
            pl.BlockSpec((K, TM), lambda i: (0, i)),             # patches
            pl.BlockSpec((Cout, K), lambda i: (0, 0)),           # weight
            pl.BlockSpec((Cout, 1), lambda i: (0, 0)),           # bias
            pl.BlockSpec((N, TL), lambda i: (0, i)),             # cat (flat)
        ],
        out_specs=[
            pl.BlockSpec((Cout, TM), lambda i: (0, i)),          # conv out
            pl.BlockSpec((N, TL), lambda i: (0, i)),             # relu out
        ],
        out_shape=[
            jax.ShapeDtypeStruct((Cout, M), jnp.float32),
            jax.ShapeDtypeStruct((N, CHW), cat.dtype),
        ],
        compiler_params=pltpu.CompilerParams(
            dimension_semantics=("parallel",)),
    )(patches_T, wT, b_col, cat_flat)

    conv_y = jnp.transpose(y_cm.reshape(Cout, N, H, W), (1, 0, 2, 3))  # NCHW
    relu_y = relu_flat.reshape(N, Cin, H, W)
    # TODO(synk): classifier convs (Conv2d(32,16,3,3,1), Conv2d(16,8,3,3,1))
    # are ill-typed in the reference forward (applied to a 3-channel tensor,
    # would raise in PyTorch) and their outputs are never returned, so they
    # are not emitted.
    return conv_y, relu_y


if __name__ == "__main__":
    key = jax.random.PRNGKey(0)
    k_x, k_w, k_b = jax.random.split(key, 3)

    # split [4,4] on dim 0 fixes batch=8; Conv2d(3, 32, ...) fixes Cin=3.
    v1 = jax.random.normal(k_x, (8, 3, 16, 16), jnp.float32)

    # Deterministic Conv2d(3, 32, 3, 1, 1) parameters, stored HWIO.
    fan_in = 3 * 3 * 3
    conv_w = jax.random.normal(k_w, (3, 3, 3, 32), jnp.float32) / np.sqrt(fan_in)
    conv_b = 0.01 * jax.random.normal(k_b, (32,), jnp.float32)

    # --- hot path: what Model.forward actually returns ----------------------
    cat, (s0, s1) = model_forward(v1)
    jax.block_until_ready((cat, s0, s1))

    v1_np = np.asarray(v1)
    assert np.array_equal(np.asarray(cat), v1_np)
    assert np.array_equal(np.asarray(s0), v1_np[:4])
    assert np.array_equal(np.asarray(s1), v1_np[4:])

    # --- dead `features` branch: fused Pallas conv+relu kernel --------------
    conv_y, relu_y = features_forward(cat, conv_w, conv_b)
    jax.block_until_ready((conv_y, relu_y))

    conv_ref = jax.lax.conv_general_dilated(
        jnp.transpose(cat, (0, 2, 3, 1)), conv_w,
        window_strides=(1, 1), padding=[(1, 1), (1, 1)],
        dimension_numbers=("NHWC", "HWIO", "NHWC")) + conv_b
    conv_ref = jnp.transpose(conv_ref, (0, 3, 1, 2))
    assert np.allclose(np.asarray(conv_y), np.asarray(conv_ref),
                       rtol=1e-4, atol=1e-4)
    assert np.array_equal(np.asarray(relu_y), np.maximum(v1_np, 0.0))

    print("KERNEL_OK")
</pallas_src>

<mosaic_0001>
module attributes {stable_mosaic.version = 11 : i64} {
  func.func @conv_relu_kernel(%arg0: i32, %arg1: memref<27x1024xf32, #tpu.memory_space<vmem>>, %arg2: memref<32x27xf32, #tpu.memory_space<vmem>>, %arg3: memref<32x1xf32, #tpu.memory_space<vmem>>, %arg4: memref<8x384xf32, #tpu.memory_space<vmem>>, %arg5: memref<32x1024xf32, #tpu.memory_space<vmem>>, %arg6: memref<8x384xf32, #tpu.memory_space<vmem>>) attributes {dimension_semantics = [#tpu.dimension_semantics<parallel>], iteration_bounds = array<i64: 2>, scalar_prefetch = 0 : i64, scratch_operands = 0 : i64, tpu.core_type = #tpu.core_type<tc>, window_params = [{transform_indices = @transform_0, window_bounds = array<i64: 27, 1024>}, {pipeline_mode = #tpu.pipeline_mode<synchronous>, transform_indices = @transform_1, window_bounds = array<i64: 32, 27>}, {pipeline_mode = #tpu.pipeline_mode<synchronous>, transform_indices = @transform_2, window_bounds = array<i64: 32, 1>}, {transform_indices = @transform_3, window_bounds = array<i64: 8, 384>}, {transform_indices = @transform_4, window_bounds = array<i64: 32, 1024>}, {transform_indices = @transform_5, window_bounds = array<i64: 8, 384>}]} {
    %c0 = arith.constant 0 : index
    %c0_0 = arith.constant 0 : index
    %0 = vector.load %arg2[%c0, %c0_0] : memref<32x27xf32, #tpu.memory_space<vmem>>, vector<32x27xf32>
    %c0_1 = arith.constant 0 : index
    %c0_2 = arith.constant 0 : index
    %1 = vector.load %arg1[%c0_1, %c0_2] : memref<27x1024xf32, #tpu.memory_space<vmem>>, vector<27x1024xf32>
    %cst = arith.constant dense<0.000000e+00> : vector<32x1024xf32>
    %2 = tpu.matmul %0, %1, %cst {dimension_numbers = #tpu.dot_dimension_numbers<[1], [0], [0], [1], [0, 0, 1, 1], [], []>} : vector<32x27xf32>, vector<27x1024xf32>, vector<32x1024xf32> -> vector<32x1024xf32>
    %c0_3 = arith.constant 0 : index
    %c0_4 = arith.constant 0 : index
    %3 = vector.load %arg3[%c0_3, %c0_4] : memref<32x1xf32, #tpu.memory_space<vmem>>, vector<32x1xf32>
    %4 = vector.broadcast %3 : vector<32x1xf32> to vector<32x1024xf32>
    %5 = arith.addf %2, %4 : vector<32x1024xf32>
    %c0_5 = arith.constant 0 : index
    %c0_6 = arith.constant 0 : index
    %6 = vector.load %arg5[%c0_5, %c0_6] : memref<32x1024xf32, #tpu.memory_space<vmem>>, vector<32x1024xf32>
    tpu.vector_store %arg5[%c0_5, %c0_6], %5 {strides = array<i32>} : memref<32x1024xf32, #tpu.memory_space<vmem>>, vector<32x1024xf32>,
    %c0_7 = arith.constant 0 : index
    %c0_8 = arith.constant 0 : index
    %7 = vector.load %arg4[%c0_7, %c0_8] : memref<8x384xf32, #tpu.memory_space<vmem>>, vector<8x384xf32>
    %cst_9 = arith.constant 0.000000e+00 : f32
    %8 = vector.broadcast %cst_9 : f32 to vector<8x384xf32>
    %9 = arith.maximumf %7, %8 : vector<8x384xf32>
    %c0_10 = arith.constant 0 : index
    %c0_11 = arith.constant 0 : index
    %10 = vector.load %arg6[%c0_10, %c0_11] : memref<8x384xf32, #tpu.memory_space<vmem>>, vector<8x384xf32>
    tpu.vector_store %arg6[%c0_10, %c0_11], %9 {strides = array<i32>} : memref<8x384xf32, #tpu.memory_space<vmem>>, vector<8x384xf32>,
    return
  }
  func.func @transform_0(%arg0: i32) -> (i32, i32) {
    %c0_i32 = arith.constant 0 : i32
    %c0_i32_0 = arith.constant 0 : i32
    return %c0_i32, %arg0 : i32, i32
  }
  func.func @transform_1(%arg0: i32) -> (i32, i32) {
    %c0_i32 = arith.constant 0 : i32
    %c0_i32_0 = arith.constant 0 : i32
    %c0_i32_1 = arith.constant 0 : i32
    return %c0_i32, %c0_i32_0 : i32, i32
  }
  func.func @transform_2(%arg0: i32) -> (i32, i32) {
    %c0_i32 = arith.constant 0 : i32
    %c0_i32_0 = arith.constant 0 : i32
    %c0_i32_1 = arith.constant 0 : i32
    return %c0_i32, %c0_i32_0 : i32, i32
  }
  func.func @transform_3(%arg0: i32) -> (i32, i32) {
    %c0_i32 = arith.constant 0 : i32
    %c0_i32_0 = arith.constant 0 : i32
    return %c0_i32, %arg0 : i32, i32
  }
  func.func @transform_4(%arg0: i32) -> (i32, i32) {
    %c0_i32 = arith.constant 0 : i32
    %c0_i32_0 = arith.constant 0 : i32
    return %c0_i32, %arg0 : i32, i32
  }
  func.func @transform_5(%arg0: i32) -> (i32, i32) {
    %c0_i32 = arith.constant 0 : i32
    %c0_i32_0 = arith.constant 0 : i32
    return %c0_i32, %arg0 : i32, i32
  }
}

</mosaic_0001>

<bundles_post_ra>
// kernel: features_forward.1
= control target key start
LH: loop header
LB: loop body
LE: loop exit
PB: predicated region body
PF: predicated region fallthrough
CT: control target
= control target key end

     0   :  { %s1194_s18 = smov 0   ;;  %s1196_s19 = smov 0   ;;  %s1563_s0 = inlined_call_operand.vmem [shape: f32[27,2048], index: 0, kind: input, shape index: {}]   ;;  %s1564_s1 = inlined_call_operand.vmem [shape: f32[32,27], index: 1, kind: input, shape index: {}]   ;;  %s1565_s2 = inlined_call_operand.vmem [shape: f32[32,1], index: 2, kind: input, shape index: {}]   ;;  %s1566_s3 = inlined_call_operand.vmem [shape: f32[8,768], index: 3, kind: input, shape index: {}]   ;;  %s1567_s4 = inlined_call_operand.vmem [shape: f32[32,2048], index: 4, kind: output, shape index: {0}]   ;;  %s1568_s5 = inlined_call_operand.vmem [shape: f32[8,768], index: 5, kind: output, shape index: {1}]  }
   0x1   :  { %s1198_s20 = smov 0  }
   0x2 LB: > { %s1210_s21 = sadd.s32 4294967295, %s1159_s20   ;;  %s1213_s22 = sadd.s32 1, %s1159_s20   ;;  %s1159_s20 = sphi %s1198_s20, %s1574_s20   ;;  %s1155_s19 = sphi %s1196_s19, %s1573_s19   ;;  %s1151_s18 = sphi %s1194_s18, %s1572_s18  }
   0x3   : > { %s20_s23 = ssub.s32 %s1159_s20, %s1213_s22  ;;  %s23_s24 = sadd.s32 1, %s1155_s19 }
   0x4   : > { %p21_p0 = scmp.eq.s32.totalorder %s20_s23, 0  ;;  %p30_p1 = scmp.ne.s32.totalorder %s1155_s19, %s1151_s18 }
   0x5   : > { %p31_p2 = scmp.eq.s32.totalorder %s1159_s20, 0  ;;  %p128_p3 = scmp.eq.s32.totalorder %s1210_s21, 1 }
   0x6   : > { %s1223_s25 = scalar_select %p21_p0, %s1155_s19, %s23_s24  }
   0x7   : > { %p32_p4 = por %p31_p2, %p30_p1  ;;  %p1225_p5 = por %p128_p3, %p30_p1 }
   0x8   : > { %p1028_p6 = scmp.ge.s32.totalorder %s1159_s20, 2 }
   0xa   : > { %182 = sbr.rel (%p1028_p6) target bundleno = 37 (0x25), region = 24 }
  0x11   : > { %185 = sbr.rel (!%p32_p4) target bundleno = 37 (0x25), region = 28  ;;  %s187_s27 = sand.u32 (%p32_p4), 1, %s1155_s19  }
  0x12   : > { %s1066_s28 = sshll.u32 (%p32_p4), %s1159_s20, 6  ;;  %s1029_s29 = sshll.u32 (%p32_p4), %s187_s27, 8 }
  0x13   : > { %s1235_s7 = scalar_lea.vmem (%p32_p4), %s1563_s0, %s1066_s28  ;;  %s1240_s8 = scalar_lea.vmem (%p32_p4), [#allocation2], %s1029_s29 }
  0x14   : > { %v205_v0 = vld [vmem:[%s1235_s7] sm:$0xff] (%p32_p4)  ;;  %v207_v1 = vld [vmem:[%s1235_s7 + $0x8] sm:$0xff] (%p32_p4)  ;;  %v209_v2 = vld [vmem:[%s1235_s7 + $0x10] sm:$0xff] (%p32_p4) }
  0x15   : > { %206 = vst [vmem:[%s1240_s8] sm:$0xff] (%p32_p4), %v205_v0  ;;  %208 = vst [vmem:[%s1240_s8 + $0x8] sm:$0xff] (%p32_p4), %v207_v1  ;;  %v211_v3 = vld [vmem:[%s1235_s7 + $0x18] sm:$0xff] (%p32_p4)  ;;  %v213_v4 = vld [vmem:[%s1235_s7 + $0x20] sm:$0xff] (%p32_p4) }
  0x16   : > { %210 = vst [vmem:[%s1240_s8 + $0x10] sm:$0xff] (%p32_p4), %v209_v2  ;;  %v215_v5 = vld [vmem:[%s1235_s7 + $0x28] sm:$0xff] (%p32_p4)  ;;  %212 = vst [vmem:[%s1240_s8 + $0x18] sm:$0xff] (%p32_p4), %v211_v3  ;;  %v217_v6 = vld [vmem:[%s1235_s7 + $0x30] sm:$0xff] (%p32_p4) }
  0x17   : > { %214 = vst [vmem:[%s1240_s8 + $0x20] sm:$0xff] (%p32_p4), %v213_v4  ;;  %216 = vst [vmem:[%s1240_s8 + $0x28] sm:$0xff] (%p32_p4), %v215_v5  ;;  %v219_v7 = vld [vmem:[%s1235_s7 + $0x38] sm:$0xff] (%p32_p4)  ;;  %v221_v8 = vld [vmem:[%s1235_s7 + $0x80] sm:$0xff] (%p32_p4) }
  0x18   : > { %218 = vst [vmem:[%s1240_s8 + $0x30] sm:$0xff] %v217_v6  ;;  %220 = vst [vmem:[%s1240_s8 + $0x38] sm:$0xff] %v219_v7  ;;  %v223_v9 = vld [vmem:[%s1235_s7 + $0x88] sm:$0xff]  ;;  %v225_v10 = vld [vmem:[%s1235_s7 + $0x90] sm:$0xff] }
  0x19   : > { %222 = vst [vmem:[%s1240_s8 + $0x40] sm:$0xff] %v221_v8  ;;  %v227_v11 = vld [vmem:[%s1235_s7 + $0x98] sm:$0xff]  ;;  %224 = vst [vmem:[%s1240_s8 + $0x48] sm:$0xff] %v223_v9  ;;  %v229_v12 = vld [vmem:[%s1235_s7 + $0xa0] sm:$0xff] }
  0x1a   : > { %226 = vst [vmem:[%s1240_s8 + $0x50] sm:$0xff] %v225_v10  ;;  %228 = vst [vmem:[%s1240_s8 + $0x58] sm:$0xff] %v227_v11  ;;  %v231_v13 = vld [vmem:[%s1235_s7 + $0xa8] sm:$0xff]  ;;  %v233_v14 = vld [vmem:[%s1235_s7 + $0xb0] sm:$0xff] }
  0x1b   : > { %230 = vst [vmem:[%s1240_s8 + $0x60] sm:$0xff] %v229_v12  ;;  %232 = vst [vmem:[%s1240_s8 + $0x68] sm:$0xff] %v231_v13  ;;  %v235_v15 = vld [vmem:[%s1235_s7 + $0xb8] sm:$0xff]  ;;  %v237_v16 = vld [vmem:[%s1235_s7 + $0x100] sm:$0xff] }
  0x1c   : > { %234 = vst [vmem:[%s1240_s8 + $0x70] sm:$0xff] %v233_v14  ;;  %v239_v17 = vld [vmem:[%s1235_s7 + $0x108] sm:$0xff]  ;;  %236 = vst [vmem:[%s1240_s8 + $0x78] sm:$0xff] %v235_v15  ;;  %v241_v18 = vld [vmem:[%s1235_s7 + $0x110] sm:$0xff] }
  0x1d   : > { %238 = vst [vmem:[%s1240_s8 + $0x80] sm:$0xff] %v237_v16  ;;  %240 = vst [vmem:[%s1240_s8 + $0x88] sm:$0xff] %v239_v17  ;;  %v243_v19 = vld [vmem:[%s1235_s7 + $0x118] sm:$0xff]  ;;  %v245_v20 = vld [vmem:[%s1235_s7 + $0x120] sm:$0xff] }
  0x1e   : > { %242 = vst [vmem:[%s1240_s8 + $0x90] sm:$0xff] %v241_v18  ;;  %244 = vst [vmem:[%s1240_s8 + $0x98] sm:$0xff] %v243_v19  ;;  %v247_v21 = vld [vmem:[%s1235_s7 + $0x128] sm:$0xff]  ;;  %v249_v22 = vld [vmem:[%s1235_s7 + $0x130] sm:$0xff] }
  0x1f   : > { %246 = vst [vmem:[%s1240_s8 + $0xa0] sm:$0xff] %v245_v20  ;;  %v251_v23 = vld [vmem:[%s1235_s7 + $0x138] sm:$0xff]  ;;  %248 = vst [vmem:[%s1240_s8 + $0xa8] sm:$0xff] %v247_v21  ;;  %v253_v24 = vld [vmem:[%s1235_s7 + $0x180] sm:$0xff] }
  0x20   : > { %250 = vst [vmem:[%s1240_s8 + $0xb0] sm:$0xff] %v249_v22  ;;  %252 = vst [vmem:[%s1240_s8 + $0xb8] sm:$0xff] %v251_v23  ;;  %v255_v25 = vld [vmem:[%s1235_s7 + $0x188] sm:$0xff]  ;;  %v257_v26 = vld [vmem:[%s1235_s7 + $0x190] sm:$0xff] }
  0x21   : > { %254 = vst [vmem:[%s1240_s8 + $0xc0] sm:$0xff] %v253_v24  ;;  %256 = vst [vmem:[%s1240_s8 + $0xc8] sm:$0xff] %v255_v25  ;;  %v259_v27 = vld [vmem:[%s1235_s7 + $0x198] sm:$0xff]  ;;  %v261_v28 = vld [vmem:[%s1235_s7 + $0x1a0] sm:$0xff] }
  0x22   : > { %258 = vst [vmem:[%s1240_s8 + $0xd0] sm:$0xff] %v257_v26  ;;  %v263_v29 = vld [vmem:[%s1235_s7 + $0x1a8] sm:$0xff]  ;;  %260 = vst [vmem:[%s1240_s8 + $0xd8] sm:$0xff] %v259_v27  ;;  %v265_v30 = vld [vmem:[%s1235_s7 + $0x1b0] sm:$0xff] }
  0x23   : > { %262 = vst [vmem:[%s1240_s8 + $0xe0] sm:$0xff] %v261_v28  ;;  %264 = vst [vmem:[%s1240_s8 + $0xe8] sm:$0xff] %v263_v29  ;;  %v267_v31 = vld [vmem:[%s1235_s7 + $0x1b8] sm:$0xff] }
  0x24   : > { %266 = vst [vmem:[%s1240_s8 + $0xf0] sm:$0xff] %v265_v30  ;;  %268 = vst [vmem:[%s1240_s8 + $0xf8] sm:$0xff] %v267_v31 }
  0x25 PF: > { %p1032_p7 = scmp.ge.s32.totalorder %s1159_s20, 1  ;;  %p282_p8 = scmp.lt.s32.totalorder %s1159_s20, 3 }
  0x27   : > { %p283_p9 = pnand %p1032_p7, %p282_p8 }
  0x28   : > { %s289_s9 = sand.u32 (!%p283_p9), 1, %s1151_s18   ;;  %vm412_vm0 = vcmask (!%p283_p9), 1042432   ;;  %v1161_v32 = vmov (!%p283_p9), 0.0   ;;  %vm1162_vm1 = vmmov (!%p283_p9), 1   ;;  %v1163_v34 = vmov (!%p283_p9), 0   ;;  %v375_v35 = vld [vmem:[%s1565_s2] sm:$0xff] (!%p283_p9) }
  0x29   : > { %286 = sbr.rel (%p283_p9) target bundleno = 308 (0x134), region = 55  ;;  %s1306_s10 = sshll.u32 (!%p283_p9), %s289_s9, 8  ;;  %501 = vmatprep.mubr.f32.mxu0 (!%p283_p9), %v1161_v32  ;;  %590 = vmatprep.mubr.f32.mxu1 (!%p283_p9), %v1161_v32  ;;  %vm1310_vm2 = vmpackc.low (!%p283_p9), %vm412_vm0, %vm1162_vm1  ;;  %v376_v39 = vld [vmem:[%s1565_s2 + $0x8] sm:$0xff] (!%p283_p9)  ;;  %v339_v63 = vld [vmem:[%s1564_s1] sm:$0xff] (!%p283_p9)  ;;  %vm399_vm3 = vcmask (!%p283_p9), 220160  }
  0x2a   : > { %1135 = vset.pattern.permute.xlu0 (!%p283_p9), %v1163_v34  ;;  %1136 = vset.pattern.permute.xlu1 (!%p283_p9), %v1163_v34  ;;  %s1318_s13 = scalar_lea.vmem (!%p283_p9), [#allocation2], %s1306_s10  ;;  %v377_v17 = vld [vmem:[%s1565_s2 + $0x10] sm:$0xff] (!%p283_p9)  ;;  %v340_v21 = vld [vmem:[%s1564_s1 + $0x8] sm:$0xff] (!%p283_p9)  ;;  %v378_v24 = vld [vmem:[%s1565_s2 + $0x18] sm:$0xff] (!%p283_p9)  ;;  %s326_s8 = smul.u32 (!%p283_p9), 3, %s1210_s21 }
  0x2b   : > { %v344_v36 = vld [vmem:[%s1318_s13 + $0x8] sm:$0xff] (!%p283_p9)  ;;  %v346_v38 = vld [vmem:[%s1318_s13 + $0x18] sm:$0xff] (!%p283_p9)  ;;  %381 = vperm.xlu0 (!%p283_p9), %1135, %v375_v35   ;;  %v343_v42 = vld [vmem:[%s1318_s13] sm:$0xff] (!%p283_p9)  ;;  %391 = vperm.xlu1 (!%p283_p9), %1136, %v377_v17   ;;  %s1429_s17 = scalar_lea.vmem (!%p283_p9), [#allocation3], %s1306_s10 }
  0x2c   : > { %v352_v37 = vld [vmem:[%s1318_s13 + $0x48] sm:$0xff] (!%p283_p9)  ;;  %v354_v41 = vld [vmem:[%s1318_s13 + $0x58] sm:$0xff] (!%p283_p9)  ;;  %v351_v43 = vld [vmem:[%s1318_s13 + $0x40] sm:$0xff] (!%p283_p9)  ;;  %p327_p10 = scmp.lt.s32.totalorder (!%p283_p9), %s326_s8, 5 }
  0x2d   : > { %v1068_v40 = vpack.c.bf16 (!%p283_p9), %v352_v37, %v344_v36  ;;  %v1078_v44 = vpack.c.bf16 (!%p283_p9), %v354_v41, %v346_v38  ;;  %v1070_v45 = vpack.c.bf16 (!%p283_p9), %v351_v43, %v343_v42  ;;  %v345_v46 = vld [vmem:[%s1318_s13 + $0x10] sm:$0xff] (!%p283_p9)  ;;  %v360_v48 = vld [vmem:[%s1318_s13 + $0x88] sm:$0xff] (!%p283_p9)  ;;  %v362_v51 = vld [vmem:[%s1318_s13 + $0x98] sm:$0xff] (!%p283_p9) }
  0x2e   : > { %v353_v47 = vld [vmem:[%s1318_s13 + $0x50] sm:$0xff] (!%p283_p9)  ;;  %v368_v50 = vld [vmem:[%s1318_s13 + $0xc8] sm:$0x7] (!%p283_p9)  ;;  %v370_v52 = vld [vmem:[%s1318_s13 + $0xd8] sm:$0x7] (!%p283_p9) }
  0x2f   : > { %1069 = vmatprep.subr.bf16.mxu0 (!%p283_p9), %v1068_v40  ;;  %v1080_v49 = vpack.c.bf16 (!%p283_p9), %v353_v47, %v345_v46  ;;  %1079 = vmatprep.subr.bf16.mxu1 (!%p283_p9), %v1078_v44  ;;  %v1072_v53 = vpack.c.bf16 (!%p283_p9), %v368_v50, %v360_v48  ;;  %v1082_v54 = vpack.c.bf16 (!%p283_p9), %v370_v52, %v362_v51  ;;  %v359_v55 = vld [vmem:[%s1318_s13 + $0x80] sm:$0xff] (!%p283_p9)  ;;  %v361_v57 = vld [vmem:[%s1318_s13 + $0x90] sm:$0xff] (!%p283_p9)  ;;  %v348_v60 = vld [vmem:[%s1318_s13 + $0x28] sm:$0xff] (!%p283_p9) }
  0x30   : > { %1071 = vmatpush1.bf16.msra.mxu0 %v1070_v45  ;;  %v367_v56 = vld [vmem:[%s1318_s13 + $0xc0] sm:$0x7]  ;;  %v369_v59 = vld [vmem:[%s1318_s13 + $0xd0] sm:$0x7]  ;;  %v356_v61 = vld [vmem:[%s1318_s13 + $0x68] sm:$0xff]  ;;  %386 = vperm.xlu0 %1135, %v376_v39   ;;  %s1576_s8 = smov (!%p327_p10, %s326_s8), 5 }
  0x31   : > { %1081 = vmatpush1.bf16.msra.mxu1 %v1080_v49  ;;  %v1075_v58 = vpack.c.bf16 %v367_v56, %v359_v55  ;;  %1074 = vmatprep.subr.msk.bf16.mxu0 %vm1310_vm2, %v1072_v53  ;;  %v1085_v62 = vpack.c.bf16 %v369_v59, %v361_v57  ;;  %v1088_v0 = vpack.c.bf16 %v356_v61, %v348_v60  ;;  %v350_v1 = vld [vmem:[%s1318_s13 + $0x38] sm:$0xff]  ;;  %v347_v3 = vld [vmem:[%s1318_s13 + $0x20] sm:$0xff]  ;;  %v349_v6 = vld [vmem:[%s1318_s13 + $0x30] sm:$0xff]  ;;  %s1035_s9 = sshll.u32 %s1576_s8, 3  ;;  %s1067_s10 = sshll.u32 (%p1225_p5), %s1210_s21, 6 }
  0x32   : > { %1084 = vmatprep.subr.msk.bf16.mxu1 %vm1310_vm2, %v1082_v54  ;;  %v358_v2 = vld [vmem:[%s1318_s13 + $0x78] sm:$0xff]  ;;  %v355_v5 = vld [vmem:[%s1318_s13 + $0x60] sm:$0xff]  ;;  %v357_v7 = vld [vmem:[%s1318_s13 + $0x70] sm:$0xff]  ;;  %396 = vperm.xlu1 %1136, %v378_v24   ;;  %s337_s16 = scalar_lea.vmem %s1568_s5, %s1035_s9  ;;  %s1490_s23 = scalar_lea.vmem (%p1225_p5), %s1567_s4, %s1067_s10 }
  0x33   : > { %v1098_v4 = vpack.c.bf16 %v358_v2, %v350_v1  ;;  %v1090_v8 = vpack.c.bf16 %v355_v5, %v347_v3  ;;  %v364_v9 = vld [vmem:[%s1318_s13 + $0xa8] sm:$0xff]  ;;  %v366_v11 = vld [vmem:[%s1318_s13 + $0xb8] sm:$0xff]  ;;  %v1100_v12 = vpack.c.bf16 %v357_v7, %v349_v6  ;;  %v363_v15 = vld [vmem:[%s1318_s13 + $0xa0] sm:$0xff] }
  0x34   : > { %1077 = vmatpush1.bf16.msk.msra.mxu0 %vm1310_vm2, %v1075_v58  ;;  %v372_v10 = vld [vmem:[%s1318_s13 + $0xe8] sm:$0x7]  ;;  %v374_v13 = vld [vmem:[%s1318_s13 + $0xf8] sm:$0x7]  ;;  %v371_v16 = vld [vmem:[%s1318_s13 + $0xe0] sm:$0x7] }
  0x35   : > { %1087 = vmatpush1.bf16.msk.msra.mxu1 %vm1310_vm2, %v1085_v62  ;;  %1089 = vmatprep.subr.bf16.mxu0 %v1088_v0  ;;  %v1092_v14 = vpack.c.bf16 %v372_v10, %v364_v9  ;;  %v1102_v18 = vpack.c.bf16 %v374_v13, %v366_v11  ;;  %v365_v19 = vld [vmem:[%s1318_s13 + $0xb0] sm:$0xff]  ;;  %v1095_v22 = vpack.c.bf16 %v371_v16, %v363_v15  ;;  %v342_v26 = vld [vmem:[%s1564_s1 + $0x18] sm:$0xff] }
  0x36   : > { %1099 = vmatprep.subr.bf16.mxu1 %v1098_v4  ;;  %v373_v20 = vld [vmem:[%s1318_s13 + $0xf0] sm:$0x7]  ;;  %s330_s13 = scalar_lea.vmem %s1566_s3, %s1035_s9 }
  0x37   : > { %1039 = vmatmul.mubr.msk.f32.vlgmr.msra.gmra.mrb[0].mxu0 %vm399_vm3, %v339_v63  ;;  %v1105_v23 = vpack.c.bf16 %v373_v20, %v365_v19  ;;  %v341_v25 = vld [vmem:[%s1564_s1 + $0x10] sm:$0xff]  ;;  %v825_v27 = vld [vmem:[%s330_s13] sm:$0xff]  ;;  %v826_v28 = vld [vmem:[%s330_s13 + $0x8] sm:$0xff] }
  0x38   : > { %1045 = vmatmul.mubr.msk.f32.vlgmr.msra.gmra.mrb[0].mxu1 %vm399_vm3, %v339_v63  ;;  %1091 = vmatpush1.bf16.msra.mxu0 %v1090_v8  ;;  %v827_v29 = vld [vmem:[%s330_s13 + $0x10] sm:$0xff]  ;;  %v828_v30 = vmax.f32 %v825_v27, 0.0  ;;  %v829_v31 = vmax.f32 %v826_v28, 0.0 }
  0x39   : > { %1101 = vmatpush1.bf16.msra.mxu1 %v1100_v12  ;;  %507 = vmatprep.mubr.f32.mxu0 %v1161_v32 }
  0x3a   : > { %596 = vmatprep.mubr.f32.mxu1 %v1161_v32  ;;  %1094 = vmatprep.subr.msk.bf16.mxu0 %vm1310_vm2, %v1092_v14  ;;  %831 = vst [vmem:[%s337_s16] sm:$0xff] %v828_v30  ;;  %832 = vst [vmem:[%s337_s16 + $0x8] sm:$0xff] %v829_v31 }
  0x3b   : > { %1040 = vmatmul.mubr.msk.f32.gmra.mrb[2].mxu0 %vm399_vm3, %v340_v21  ;;  %1104 = vmatprep.subr.msk.bf16.mxu1 %vm1310_vm2, %v1102_v18 }
  0x3c   : > { %1046 = vmatmul.mubr.msk.f32.gmra.mrb[2].mxu1 %vm399_vm3, %v340_v21  ;;  %513 = vmatprep.mubr.f32.mxu0 %v1161_v32 }
  0x3d   : > { %602 = vmatprep.mubr.f32.mxu1 %v1161_v32  ;;  %1097 = vmatpush1.bf16.msk.msra.mxu0 %vm1310_vm2, %v1095_v22 }
  0x3e   : > { %1107 = vmatpush1.bf16.msk.msra.mxu1 %vm1310_vm2, %v1105_v23 }
  0x3f   : > { %1041 = vmatmul.mubr.msk.f32.gmra.mrb[4].mxu0 %vm399_vm3, %v341_v25 }
  0x40   : > { %1047 = vmatmul.mubr.msk.f32.gmra.mrb[4].mxu1 %vm399_vm3, %v341_v25  ;;  %519 = vmatprep.mubr.f32.mxu0 %v1161_v32 }
  0x41   : > { %608 = vmatprep.mubr.f32.mxu1 %v1161_v32 }
  0x43   : > { %1042 = vmatmul.mubr.msk.f32.gmra.mrb[6].mxu0 %vm399_vm3, %v342_v26 }
  0x44   : > { %1048 = vmatmul.mubr.msk.f32.gmra.mrb[6].mxu1 %vm399_vm3, %v342_v26  ;;  %679 = vmatprep.mubr.f32.mxu0 %v1161_v32 }
  0x45   : > { %768 = vmatprep.mubr.f32.mxu1 %v1161_v32 }
  0x47   : > { %1051 = vmatmul.mubr.msk.f32.vlgmr.msra.gmra.mrb[8].mxu0 %vm399_vm3, %v339_v63 }
  0x48   : > { %1057 = vmatmul.mubr.msk.f32.vlgmr.msra.gmra.mrb[8].mxu1 %vm399_vm3, %v339_v63  ;;  %685 = vmatprep.mubr.f32.mxu0 %v1161_v32 }
  0x49   : > { %774 = vmatprep.mubr.f32.mxu1 %v1161_v32 }
  0x4b   : > { %1052 = vmatmul.mubr.msk.f32.gmra.mrb[10].mxu0 %vm399_vm3, %v340_v21 }
  0x4c   : > { %1058 = vmatmul.mubr.msk.f32.gmra.mrb[10].mxu1 %vm399_vm3, %v340_v21  ;;  %691 = vmatprep.mubr.f32.mxu0 %v1161_v32 }
  0x4d   : > { %780 = vmatprep.mubr.f32.mxu1 %v1161_v32 }
  0x4f   : > { %1053 = vmatmul.mubr.msk.f32.gmra.mrb[12].mxu0 %vm399_vm3, %v341_v25 }
  0x50   : > { %1059 = vmatmul.mubr.msk.f32.gmra.mrb[12].mxu1 %vm399_vm3, %v341_v25  ;;  %697 = vmatprep.mubr.f32.mxu0 %v1161_v32 }
  0x51   : > { %786 = vmatprep.mubr.f32.mxu1 %v1161_v32  ;;  %v830_v32 = vmax.f32 %v827_v29, 0.0 }
  0x53   : > { %1054 = vmatmul.mubr.msk.f32.gmra.mrb[14].mxu0 %vm399_vm3, %v342_v26  ;;  %833 = vst [vmem:[%s337_s16 + $0x10] sm:$0xff] %v830_v32 }
  0x54   : > { %1060 = vmatmul.mubr.msk.f32.gmra.mrb[14].mxu1 %vm399_vm3, %v342_v26 }
  0xaa   : > { %v382_v33 = vpop.permute.xlu0 %381  ;;  %v1434_v44 = vpop.permute.xlu1 %391 }
  0xaf   : > { %v1426_v41 = vpop.permute.xlu0 %386 }
  0xb1   : > { %v397_v59 = vpop.permute.xlu1 %396 }
 0x10a   : > { %v503_v34 = vpop.f32.mrb[0].mxu0 }
 0x10b   : > { %v592_v35 = vpop.f32.mrb[0].mxu1  ;;  %v504_v36 = vadd.f32 %v503_v34, %v382_v33  ;;  %v505_v37 = vpop.f32.mrb[1].mxu0 }
 0x10c   : > { %v593_v38 = vadd.f32 %v592_v35, %v382_v33  ;;  %v506_v39 = vadd.f32 %v505_v37, %v382_v33  ;;  %v594_v40 = vpop.f32.mrb[1].mxu1 }
 0x10d   : > { %793 = vst [vmem:[%s1429_s17] sm:$0xff] %v504_v36  ;;  %v595_v42 = vadd.f32 %v594_v40, %v382_v33 }
 0x10e   : > { %795 = vst [vmem:[%s1429_s17 + $0x10] sm:$0xff] %v593_v38  ;;  %794 = vst [vmem:[%s1429_s17 + $0x8] sm:$0xff] %v506_v39  ;;  %v509_v43 = vpop.f32.mrb[2].mxu0 }
 0x10f   : > { %796 = vst [vmem:[%s1429_s17 + $0x18] sm:$0xff] %v595_v42  ;;  %v598_v45 = vpop.f32.mrb[2].mxu1  ;;  %v510_v46 = vadd.f32 %v509_v43, %v1426_v41  ;;  %v511_v47 = vpop.f32.mrb[3].mxu0 }
 0x110   : > { %v599_v48 = vadd.f32 %v598_v45, %v1426_v41  ;;  %v512_v49 = vadd.f32 %v511_v47, %v1426_v41  ;;  %v600_v50 = vpop.f32.mrb[3].mxu1 }
 0x111   : > { %801 = vst [vmem:[%s1429_s17 + $0x40] sm:$0xff] %v510_v46  ;;  %v601_v51 = vadd.f32 %v600_v50, %v1426_v41 }
 0x112   : > { %803 = vst [vmem:[%s1429_s17 + $0x50] sm:$0xff] %v599_v48  ;;  %802 = vst [vmem:[%s1429_s17 + $0x48] sm:$0xff] %v512_v49  ;;  %v515_v52 = vpop.f32.mrb[4].mxu0 }
 0x113   : > { %804 = vst [vmem:[%s1429_s17 + $0x58] sm:$0xff] %v601_v51  ;;  %v604_v53 = vpop.f32.mrb[4].mxu1  ;;  %v516_v54 = vadd.f32 %v515_v52, %v1434_v44  ;;  %v517_v55 = vpop.f32.mrb[5].mxu0 }
 0x114   : > { %v605_v56 = vadd.f32 %v604_v53, %v1434_v44  ;;  %v518_v57 = vadd.f32 %v517_v55, %v1434_v44  ;;  %v606_v58 = vpop.f32.mrb[5].mxu1  ;;  %v861_v37 = vld [vmem:[%s1429_s17] sm:$0xff] (%p1225_p5) }
 0x115   : > { %809 = vst [vmem:[%s1429_s17 + $0x80] sm:$0xff] %v516_v54  ;;  %v607_v60 = vadd.f32 %v606_v58, %v1434_v44  ;;  %v863_v38 = vld [vmem:[%s1429_s17 + $0x8] sm:$0xff] (%p1225_p5)  ;;  %v865_v39 = vld [vmem:[%s1429_s17 + $0x10] sm:$0xff] (%p1225_p5)  ;;  %862 = vst [vmem:[%s1490_s23] sm:$0xff] (%p1225_p5), %v861_v37 }
 0x116   : > { %811 = vst [vmem:[%s1429_s17 + $0x90] sm:$0xff] %v605_v56  ;;  %810 = vst [vmem:[%s1429_s17 + $0x88] sm:$0xff] %v518_v57  ;;  %v521_v61 = vpop.f32.mrb[6].mxu0  ;;  %v867_v40 = vld [vmem:[%s1429_s17 + $0x18] sm:$0xff] (%p1225_p5) }
 0x117   : > { %812 = vst [vmem:[%s1429_s17 + $0x98] sm:$0xff] %v607_v60  ;;  %v610_v62 = vpop.f32.mrb[6].mxu1  ;;  %v522_v63 = vadd.f32 %v521_v61, %v397_v59  ;;  %v523_v0 = vpop.f32.mrb[7].mxu0  ;;  %864 = vst [vmem:[%s1490_s23 + $0x8] sm:$0xff] (%p1225_p5), %v863_v38 }
 0x118   : > { %v611_v1 = vadd.f32 %v610_v62, %v397_v59  ;;  %v524_v2 = vadd.f32 %v523_v0, %v397_v59  ;;  %v612_v3 = vpop.f32.mrb[7].mxu1  ;;  %866 = vst [vmem:[%s1490_s23 + $0x10] sm:$0xff] (%p1225_p5), %v865_v39  ;;  %868 = vst [vmem:[%s1490_s23 + $0x18] sm:$0xff] (%p1225_p5), %v867_v40  ;;  %v877_v45 = vld [vmem:[%s1429_s17 + $0x40] sm:$0xff] (%p1225_p5) }
 0x119   : > { %817 = vst [vmem:[%s1429_s17 + $0xc0] sm:$0xff] %v522_v63  ;;  %v613_v4 = vadd.f32 %v612_v3, %v397_v59  ;;  %878 = vst [vmem:[%s1490_s23 + $0x80] sm:$0xff] (%p1225_p5), %v877_v45  ;;  %v879_v46 = vld [vmem:[%s1429_s17 + $0x48] sm:$0xff] (%p1225_p5)  ;;  %v881_v47 = vld [vmem:[%s1429_s17 + $0x50] sm:$0xff] (%p1225_p5) }
 0x11a   : > { %819 = vst [vmem:[%s1429_s17 + $0xd0] sm:$0xff] %v611_v1  ;;  %818 = vst [vmem:[%s1429_s17 + $0xc8] sm:$0xff] %v524_v2  ;;  %v681_v5 = vpop.f32.mrb[8].mxu0  ;;  %v883_v48 = vld [vmem:[%s1429_s17 + $0x58] sm:$0xff] (%p1225_p5) }
 0x11b   : > { %820 = vst [vmem:[%s1429_s17 + $0xd8] sm:$0xff] %v613_v4  ;;  %v682_v6 = vadd.f32 %v681_v5, %v382_v33  ;;  %v770_v7 = vpop.f32.mrb[8].mxu1  ;;  %v683_v8 = vpop.f32.mrb[9].mxu0  ;;  %880 = vst [vmem:[%s1490_s23 + $0x88] sm:$0xff] (%p1225_p5), %v879_v46 }
 0x11c   : > { %v771_v9 = vadd.f32 %v770_v7, %v382_v33  ;;  %v684_v10 = vadd.f32 %v683_v8, %v382_v33  ;;  %v772_v11 = vpop.f32.mrb[9].mxu1  ;;  %882 = vst [vmem:[%s1490_s23 + $0x90] sm:$0xff] (%p1225_p5), %v881_v47  ;;  %884 = vst [vmem:[%s1490_s23 + $0x98] sm:$0xff] (%p1225_p5), %v883_v48  ;;  %v893_v53 = vld [vmem:[%s1429_s17 + $0x80] sm:$0xff] (%p1225_p5) }
 0x11d   : > { %797 = vst [vmem:[%s1429_s17 + $0x20] sm:$0xff] %v682_v6  ;;  %v773_v12 = vadd.f32 %v772_v11, %v382_v33  ;;  %v895_v54 = vld [vmem:[%s1429_s17 + $0x88] sm:$0xff] (%p1225_p5)  ;;  %894 = vst [vmem:[%s1490_s23 + $0x100] sm:$0xff] (%p1225_p5), %v893_v53  ;;  %v897_v55 = vld [vmem:[%s1429_s17 + $0x90] sm:$0xff] (%p1225_p5) }
 0x11e   : > { %799 = vst [vmem:[%s1429_s17 + $0x30] sm:$0xff] %v771_v9  ;;  %798 = vst [vmem:[%s1429_s17 + $0x28] sm:$0xff] %v684_v10  ;;  %v687_v13 = vpop.f32.mrb[10].mxu0  ;;  %v899_v56 = vld [vmem:[%s1429_s17 + $0x98] sm:$0xff] (%p1225_p5) }
 0x11f   : > { %800 = vst [vmem:[%s1429_s17 + $0x38] sm:$0xff] %v773_v12  ;;  %v688_v14 = vadd.f32 %v687_v13, %v1426_v41  ;;  %v776_v15 = vpop.f32.mrb[10].mxu1  ;;  %v689_v16 = vpop.f32.mrb[11].mxu0  ;;  %896 = vst [vmem:[%s1490_s23 + $0x108] sm:$0xff] (%p1225_p5), %v895_v54 }
 0x120   : > { %v777_v17 = vadd.f32 %v776_v15, %v1426_v41  ;;  %v690_v18 = vadd.f32 %v689_v16, %v1426_v41  ;;  %v778_v19 = vpop.f32.mrb[11].mxu1  ;;  %898 = vst [vmem:[%s1490_s23 + $0x110] sm:$0xff] (%p1225_p5), %v897_v55  ;;  %900 = vst [vmem:[%s1490_s23 + $0x118] sm:$0xff] (%p1225_p5), %v899_v56  ;;  %v909_v61 = vld [vmem:[%s1429_s17 + $0xc0] sm:$0xff] (%p1225_p5) }
 0x121   : > { %805 = vst [vmem:[%s1429_s17 + $0x60] sm:$0xff] %v688_v14  ;;  %v779_v20 = vadd.f32 %v778_v19, %v1426_v41  ;;  %v911_v62 = vld [vmem:[%s1429_s17 + $0xc8] sm:$0xff] (%p1225_p5)  ;;  %v913_v63 = vld [vmem:[%s1429_s17 + $0xd0] sm:$0xff] (%p1225_p5)  ;;  %910 = vst [vmem:[%s1490_s23 + $0x180] sm:$0xff] (%p1225_p5), %v909_v61 }
 0x122   : > { %807 = vst [vmem:[%s1429_s17 + $0x70] sm:$0xff] %v777_v17  ;;  %806 = vst [vmem:[%s1429_s17 + $0x68] sm:$0xff] %v690_v18  ;;  %v693_v21 = vpop.f32.mrb[12].mxu0  ;;  %v915_v0 = vld [vmem:[%s1429_s17 + $0xd8] sm:$0xff] (%p1225_p5) }
 0x123   : > { %808 = vst [vmem:[%s1429_s17 + $0x78] sm:$0xff] %v779_v20  ;;  %v694_v22 = vadd.f32 %v693_v21, %v1434_v44  ;;  %v782_v23 = vpop.f32.mrb[12].mxu1  ;;  %v695_v24 = vpop.f32.mrb[13].mxu0  ;;  %912 = vst [vmem:[%s1490_s23 + $0x188] sm:$0xff] (%p1225_p5), %v911_v62 }
 0x124   : > { %v783_v25 = vadd.f32 %v782_v23, %v1434_v44  ;;  %v696_v26 = vadd.f32 %v695_v24, %v1434_v44  ;;  %v784_v27 = vpop.f32.mrb[13].mxu1  ;;  %v869_v41 = vld [vmem:[%s1429_s17 + $0x20] sm:$0xff] (%p1225_p5)  ;;  %914 = vst [vmem:[%s1490_s23 + $0x190] sm:$0xff] (%p1225_p5), %v913_v63  ;;  %916 = vst [vmem:[%s1490_s23 + $0x198] sm:$0xff] (%p1225_p5), %v915_v0 }
 0x125   : > { %813 = vst [vmem:[%s1429_s17 + $0xa0] sm:$0xff] %v694_v22  ;;  %v785_v28 = vadd.f32 %v784_v27, %v1434_v44  ;;  %845 = sbr.rel (!%p1225_p5) target bundleno = 308 (0x134), region = 63  ;;  %v871_v42 = vld [vmem:[%s1429_s17 + $0x28] sm:$0xff] (%p1225_p5)  ;;  %870 = vst [vmem:[%s1490_s23 + $0x20] sm:$0xff] (%p1225_p5), %v869_v41  ;;  %v873_v43 = vld [vmem:[%s1429_s17 + $0x30] sm:$0xff] (%p1225_p5) }
 0x126   : > { %815 = vst [vmem:[%s1429_s17 + $0xb0] sm:$0xff] %v783_v25  ;;  %814 = vst [vmem:[%s1429_s17 + $0xa8] sm:$0xff] %v696_v26  ;;  %v699_v29 = vpop.f32.mrb[14].mxu0  ;;  %v875_v44 = vld [vmem:[%s1429_s17 + $0x38] sm:$0xff] (%p1225_p5) }
 0x127   : > { %816 = vst [vmem:[%s1429_s17 + $0xb8] sm:$0xff] %v785_v28  ;;  %v700_v30 = vadd.f32 %v699_v29, %v397_v59  ;;  %v788_v31 = vpop.f32.mrb[14].mxu1  ;;  %v701_v32 = vpop.f32.mrb[15].mxu0  ;;  %872 = vst [vmem:[%s1490_s23 + $0x28] sm:$0xff] (%p1225_p5), %v871_v42 }
 0x128   : > { %v789_v33 = vadd.f32 %v788_v31, %v397_v59  ;;  %v702_v34 = vadd.f32 %v701_v32, %v397_v59  ;;  %v790_v35 = vpop.f32.mrb[15].mxu1  ;;  %874 = vst [vmem:[%s1490_s23 + $0x30] sm:$0xff] (%p1225_p5), %v873_v43  ;;  %876 = vst [vmem:[%s1490_s23 + $0x38] sm:$0xff] (%p1225_p5), %v875_v44  ;;  %v885_v49 = vld [vmem:[%s1429_s17 + $0x60] sm:$0xff] (%p1225_p5) }
 0x129   : > { %821 = vst [vmem:[%s1429_s17 + $0xe0] sm:$0xff] %v700_v30  ;;  %v791_v36 = vadd.f32 %v790_v35, %v397_v59  ;;  %v887_v50 = vld [vmem:[%s1429_s17 + $0x68] sm:$0xff] (%p1225_p5)  ;;  %v889_v51 = vld [vmem:[%s1429_s17 + $0x70] sm:$0xff] (%p1225_p5)  ;;  %886 = vst [vmem:[%s1490_s23 + $0xa0] sm:$0xff] (%p1225_p5), %v885_v49 }
 0x12a   : > { %823 = vst [vmem:[%s1429_s17 + $0xf0] sm:$0xff] %v789_v33  ;;  %822 = vst [vmem:[%s1429_s17 + $0xe8] sm:$0xff] %v702_v34  ;;  %v891_v52 = vld [vmem:[%s1429_s17 + $0x78] sm:$0xff] (%p1225_p5) }
 0x12b   : > { %824 = vst [vmem:[%s1429_s17 + $0xf8] sm:$0xff] %v791_v36  ;;  %888 = vst [vmem:[%s1490_s23 + $0xa8] sm:$0xff] (%p1225_p5), %v887_v50 }
 0x12c   : > { %890 = vst [vmem:[%s1490_s23 + $0xb0] sm:$0xff] %v889_v51  ;;  %892 = vst [vmem:[%s1490_s23 + $0xb8] sm:$0xff] %v891_v52  ;;  %v901_v57 = vld [vmem:[%s1429_s17 + $0xa0] sm:$0xff] }
 0x12d   : > { %902 = vst [vmem:[%s1490_s23 + $0x120] sm:$0xff] %v901_v57  ;;  %v903_v58 = vld [vmem:[%s1429_s17 + $0xa8] sm:$0xff]  ;;  %v905_v59 = vld [vmem:[%s1429_s17 + $0xb0] sm:$0xff] }
 0x12e   : > { %v907_v60 = vld [vmem:[%s1429_s17 + $0xb8] sm:$0xff]  ;;  %904 = vst [vmem:[%s1490_s23 + $0x128] sm:$0xff] %v903_v58  ;;  %906 = vst [vmem:[%s1490_s23 + $0x130] sm:$0xff] %v905_v59 }
 0x12f   : > { %908 = vst [vmem:[%s1490_s23 + $0x138] sm:$0xff] %v907_v60 }
 0x130   : > { %v917_v1 = vld [vmem:[%s1429_s17 + $0xe0] sm:$0xff] }
 0x131   : > { %v919_v2 = vld [vmem:[%s1429_s17 + $0xe8] sm:$0xff]  ;;  %918 = vst [vmem:[%s1490_s23 + $0x1a0] sm:$0xff] %v917_v1  ;;  %v921_v3 = vld [vmem:[%s1429_s17 + $0xf0] sm:$0xff] }
 0x132   : > { %920 = vst [vmem:[%s1490_s23 + $0x1a8] sm:$0xff] %v919_v2  ;;  %v923_v4 = vld [vmem:[%s1429_s17 + $0xf8] sm:$0xff]  ;;  %922 = vst [vmem:[%s1490_s23 + $0x1b0] sm:$0xff] %v921_v3 }
 0x133   : > { %924 = vst [vmem:[%s1490_s23 + $0x1b8] sm:$0xff] %v923_v4 }
 0x134 PF: > { %p13_p11 = scmp.ge.s32.totalorder %s1213_s22, 4   ;;  %s1572_s18 = smov %s1155_s19 }
 0x135   : > { %s1573_s19 = smov %s1223_s25  ;;  %s1574_s20 = smov %s1213_s22 }
 0x136   :  { %15 = sbr.rel (!%p13_p11) target bundleno = 2 (0x2), region = 132 }

</bundles_post_ra>
